<compile_context>
chip_gen: v5e
topology: v5e:2x2
jax: 0.10.0
libtpu: 0.0.40
codegen_flags: <defaults>
</compile_context>

<pallas_src>
import functools

import jax
import jax.numpy as jnp
from jax.experimental import pallas as pl
from jax.experimental.pallas import tpu as pltpu


def _round_up(n, m):
    return ((n + m - 1) // m) * m


def _pointwise_backbone_kernel(seg_ref, x_ref, w1_ref, b1_ref, w2_ref, b2_ref,
                               w3_ref, b3_ref, out_ref, *, do_normalize):
    """Channel-major fused per-point MLP (1x1 sparse convs) + optional L2 norm.

    One grid step processes a lane-dense tile of points:
      x_ref   : [c_in,  tile_n]  bf16   (points on the lane axis)
      out_ref : [c_out, tile_n]  f32
    seg_ref[i] gives the segment of tile i (0 = obj, 1 = scene); the weight
    BlockSpec index_maps already selected the matching parameter set.
    """
    seg = seg_ref[pl.program_id(0)]
    x = x_ref[...]                                          # bf16 [c_in, tile_n]

    h = jnp.dot(w1_ref[...], x, preferred_element_type=jnp.float32) + b1_ref[...]
    h = jnp.maximum(h, 0.0).astype(jnp.bfloat16)
    h = jnp.dot(w2_ref[...], h, preferred_element_type=jnp.float32) + b2_ref[...]
    h = jnp.maximum(h, 0.0).astype(jnp.bfloat16)
    h = jnp.dot(w3_ref[...], h, preferred_element_type=jnp.float32) + b3_ref[...]

    if do_normalize:
        # Reproduce the original quirk:
        #   obj:   F / ||F||_2          scene: F / ||F + 1e-12||_2
        eps = jnp.where(seg == 1, jnp.float32(1e-12), jnp.float32(0.0))
        n_src = h + eps
        inv = jax.lax.rsqrt(jnp.sum(n_src * n_src, axis=0, keepdims=True))
        # NOTE: padded (all-zero) obj columns become NaN here (rsqrt(0)); they
        # are sliced off in the wrapper and never returned.
        h = h * inv

    out_ref[...] = h.astype(out_ref.dtype)


@functools.partial(jax.jit, static_argnames=("normalize", "max_tile_n"))
def _fused_forward(obj, scene, wt1, b1, wt2, b2, wt3, b3, *,
                   normalize, max_tile_n=8192):
    """Run both backbones in one pallas_call.

    obj/scene: [N_i, C_in] float features of the two sparse tensors.
    wt*: [2, out_dim, in_dim] bf16 (pre-transposed, obj/scene stacked).
    b*:  [2, out_dim, 1] f32.
    """
    n_obj, c_in = obj.shape
    n_scene, c_in2 = scene.shape
    assert c_in == c_in2
    hidden = wt1.shape[1]
    c_out = wt3.shape[1]

    # Lane tile: as large as useful, multiple of 128, clamped to point count.
    tile_n = min(max_tile_n, _round_up(max(n_obj, n_scene), 128))
    n_obj_pad = _round_up(n_obj, tile_n)
    n_scene_pad = _round_up(n_scene, tile_n)
    n_total = n_obj_pad + n_scene_pad
    num_tiles = n_total // tile_n

    # Channel-major bf16 staging (points on the lane axis), pad + concat.
    obj_cm = jnp.pad(obj.astype(jnp.bfloat16).T,
                     ((0, 0), (0, n_obj_pad - n_obj)))
    scene_cm = jnp.pad(scene.astype(jnp.bfloat16).T,
                       ((0, 0), (0, n_scene_pad - n_scene)))
    x_cm = jnp.concatenate([obj_cm, scene_cm], axis=1)      # [c_in, n_total]

    # Per-tile segment id (0 = obj, 1 = scene), prefetched to SMEM.
    seg_ids = jnp.concatenate([
        jnp.zeros((n_obj_pad // tile_n,), jnp.int32),
        jnp.ones((n_scene_pad // tile_n,), jnp.int32)])

    kernel = functools.partial(_pointwise_backbone_kernel,
                               do_normalize=normalize)

    def w_spec(shape):
        # Tiny per-segment parameter block, selected by the tile's segment id.
        return pl.BlockSpec(shape, lambda i, seg: (seg[i], 0, 0))

    out_cm = pl.pallas_call(
        kernel,
        out_shape=jax.ShapeDtypeStruct((c_out, n_total), jnp.float32),
        grid_spec=pltpu.PrefetchScalarGridSpec(
            num_scalar_prefetch=1,
            grid=(num_tiles,),
            in_specs=[
                # lane-dense point-feature tile
                pl.BlockSpec((c_in, tile_n), lambda i, seg: (0, i)),
                # per-segment weights / biases
                w_spec((None, hidden, c_in)),
                w_spec((None, hidden, 1)),
                w_spec((None, hidden, hidden)),
                w_spec((None, hidden, 1)),
                w_spec((None, c_out, hidden)),
                w_spec((None, c_out, 1)),
            ],
            out_specs=pl.BlockSpec((c_out, tile_n), lambda i, seg: (0, i)),
        ),
        compiler_params=pltpu.CompilerParams(
            dimension_semantics=("parallel",)),
    )(seg_ids, x_cm, wt1, b1, wt2, b2, wt3, b3)

    obj_out = out_cm[:, :n_obj].T
    scene_out = out_cm[:, n_obj_pad:n_obj_pad + n_scene].T
    return obj_out, scene_out


def _init_backbone_params(key, in_channels, hidden, out_channels):
    """Deterministic parameter init for one backbone (stored in f32)."""
    k1, k2, k3 = jax.random.split(key, 3)
    s1 = 1.0 / jnp.sqrt(jnp.float32(in_channels))
    s2 = 1.0 / jnp.sqrt(jnp.float32(hidden))
    w1 = jax.random.normal(k1, (in_channels, hidden), jnp.float32) * s1
    b1 = jnp.zeros((hidden,), jnp.float32)
    w2 = jax.random.normal(k2, (hidden, hidden), jnp.float32) * s2
    b2 = jnp.zeros((hidden,), jnp.float32)
    w3 = jax.random.normal(k3, (hidden, out_channels), jnp.float32) * s2
    b3 = jnp.zeros((out_channels,), jnp.float32)
    return (w1, b1, w2, b2, w3, b3)


class Metric6DNetPallas:
    """JAX/Pallas analogue of Metric6DNet (pointwise backbone path)."""

    def __init__(self, in_channels, out_channels, hidden=32, normalize=False,
                 key=None, max_tile_n=8192):
        if key is None:
            key = jax.random.PRNGKey(0)
        self.normalize = normalize
        self.max_tile_n = max_tile_n
        k_obj, k_scene = jax.random.split(key)
        # f32 parameters (kept for the pure-JAX reference).
        self.obj_params = _init_backbone_params(k_obj, in_channels, hidden,
                                                out_channels)
        self.scene_params = _init_backbone_params(k_scene, in_channels, hidden,
                                                  out_channels)

        # Kernel parameters: pre-transposed (channel-major matmul), stacked
        # over [obj, scene], cast once to their kernel dtypes.
        def stack_wt(i):
            return jnp.stack([self.obj_params[i].T,
                              self.scene_params[i].T]).astype(jnp.bfloat16)

        def stack_b(i):
            return jnp.stack([self.obj_params[i],
                              self.scene_params[i]])[:, :, None].astype(
                                  jnp.float32)

        self._kparams = (stack_wt(0), stack_b(1), stack_wt(2), stack_b(3),
                         stack_wt(4), stack_b(5))

    def __call__(self, xs):
        obj, scene = xs
        return _fused_forward(obj, scene, *self._kparams,
                              normalize=self.normalize,
                              max_tile_n=self.max_tile_n)


def _reference_forward(xs, net):
    """Pure-JAX (f32) reference for a correctness sanity check."""
    def backbone(x, params, eps_add):
        w1, b1, w2, b2, w3, b3 = params
        h = jnp.maximum(x @ w1 + b1, 0.0)
        h = jnp.maximum(h @ w2 + b2, 0.0)
        h = h @ w3 + b3
        if net.normalize:
            n_src = h + eps_add
            h = h / jnp.sqrt(jnp.sum(n_src * n_src, axis=-1, keepdims=True))
        return h
    obj, scene = xs
    return (backbone(obj, net.obj_params, 0.0),
            backbone(scene, net.scene_params, 1e-12))


if __name__ == "__main__":
    key = jax.random.PRNGKey(0)
    k_obj, k_scene, k_params = jax.random.split(key, 3)

    in_channels = 4      # e.g. RGB + occupancy feature per sparse point
    out_channels = 32
    hidden = 32
    n_obj_points = 300   # deliberately NOT a tile multiple (ragged path)
    n_scene_points = 200

    obj_feats_in = jax.random.normal(k_obj, (n_obj_points, in_channels),
                                     jnp.float32)
    scene_feats_in = jax.random.normal(k_scene, (n_scene_points, in_channels),
                                       jnp.float32)

    net = Metric6DNetPallas(in_channels, out_channels, hidden=hidden,
                            normalize=True, key=k_params)

    obj_out, scene_out = net((obj_feats_in, scene_feats_in))
    obj_out = jax.block_until_ready(obj_out)
    scene_out = jax.block_until_ready(scene_out)

    # Sanity check against the pure-JAX f32 reference.  The kernel uses bf16
    # MXU inputs (f32 accumulation, f32 output), so tolerance is loosened.
    obj_ref, scene_ref = _reference_forward((obj_feats_in, scene_feats_in),
                                            net)
    assert obj_out.shape == (n_obj_points, out_channels)
    assert scene_out.shape == (n_scene_points, out_channels)
    assert jnp.allclose(obj_out, obj_ref, atol=2e-2, rtol=2e-2)
    assert jnp.allclose(scene_out, scene_ref, atol=2e-2, rtol=2e-2)

    print("KERNEL_OK")
</pallas_src>

<mosaic_0001>
module attributes {stable_mosaic.version = 11 : i64} {
  func.func @_pointwise_backbone_kernel(%arg0: i32, %arg1: memref<2xi32, #tpu.memory_space<smem>>, %arg2: memref<4x384xbf16, #tpu.memory_space<vmem>>, %arg3: memref<1x32x4xbf16, #tpu.memory_space<vmem>>, %arg4: memref<1x32x1xf32, #tpu.memory_space<vmem>>, %arg5: memref<1x32x32xbf16, #tpu.memory_space<vmem>>, %arg6: memref<1x32x1xf32, #tpu.memory_space<vmem>>, %arg7: memref<1x32x32xbf16, #tpu.memory_space<vmem>>, %arg8: memref<1x32x1xf32, #tpu.memory_space<vmem>>, %arg9: memref<32x384xf32, #tpu.memory_space<vmem>>) attributes {dimension_semantics = [#tpu.dimension_semantics<parallel>], iteration_bounds = array<i64: 2>, scalar_prefetch = 1 : i64, scratch_operands = 0 : i64, tpu.core_type = #tpu.core_type<tc>, window_params = [{transform_indices = @transform_0, window_bounds = array<i64: 4, 384>}, {transform_indices = @transform_1, window_bounds = array<i64: 1, 32, 4>}, {transform_indices = @transform_2, window_bounds = array<i64: 1, 32, 1>}, {transform_indices = @transform_3, window_bounds = array<i64: 1, 32, 32>}, {transform_indices = @transform_4, window_bounds = array<i64: 1, 32, 1>}, {transform_indices = @transform_5, window_bounds = array<i64: 1, 32, 32>}, {transform_indices = @transform_6, window_bounds = array<i64: 1, 32, 1>}, {transform_indices = @transform_7, window_bounds = array<i64: 32, 384>}]} {
    %0 = arith.index_cast %arg0 : i32 to index
    %1 = memref.load %arg1[%0] : memref<2xi32, #tpu.memory_space<smem>>
    %c0 = arith.constant 0 : index
    %c0_0 = arith.constant 0 : index
    %2 = vector.load %arg2[%c0, %c0_0] : memref<4x384xbf16, #tpu.memory_space<vmem>>, vector<4x384xbf16>
    %c0_1 = arith.constant 0 : index
    %c0_2 = arith.constant 0 : index
    %c0_3 = arith.constant 0 : index
    %3 = vector.load %arg3[%c0_1, %c0_2, %c0_3] : memref<1x32x4xbf16, #tpu.memory_space<vmem>>, vector<1x32x4xbf16>
    %4 = vector.shape_cast %3 : vector<1x32x4xbf16> to vector<32x4xbf16>
    %cst = arith.constant dense<0.000000e+00> : vector<32x384xf32>
    %5 = tpu.matmul %4, %2, %cst {dimension_numbers = #tpu.dot_dimension_numbers<[1], [0], [0], [1], [0, 0, 1, 1], [], []>} : vector<32x4xbf16>, vector<4x384xbf16>, vector<32x384xf32> -> vector<32x384xf32>
    %c0_4 = arith.constant 0 : index
    %c0_5 = arith.constant 0 : index
    %c0_6 = arith.constant 0 : index
    %6 = vector.load %arg4[%c0_4, %c0_5, %c0_6] : memref<1x32x1xf32, #tpu.memory_space<vmem>>, vector<1x32x1xf32>
    %7 = vector.shape_cast %6 : vector<1x32x1xf32> to vector<32x1xf32>
    %8 = vector.broadcast %7 : vector<32x1xf32> to vector<32x384xf32>
    %9 = arith.addf %5, %8 : vector<32x384xf32>
    %cst_7 = arith.constant 0.000000e+00 : f32
    %10 = vector.broadcast %cst_7 : f32 to vector<32x384xf32>
    %11 = arith.maximumf %9, %10 : vector<32x384xf32>
    %12 = arith.truncf %11 : vector<32x384xf32> to vector<32x384xbf16>
    %c0_8 = arith.constant 0 : index
    %c0_9 = arith.constant 0 : index
    %c0_10 = arith.constant 0 : index
    %13 = vector.load %arg5[%c0_8, %c0_9, %c0_10] : memref<1x32x32xbf16, #tpu.memory_space<vmem>>, vector<1x32x32xbf16>
    %14 = vector.shape_cast %13 : vector<1x32x32xbf16> to vector<32x32xbf16>
    %cst_11 = arith.constant dense<0.000000e+00> : vector<32x384xf32>
    %15 = tpu.matmul %14, %12, %cst_11 {dimension_numbers = #tpu.dot_dimension_numbers<[1], [0], [0], [1], [0, 0, 1, 1], [], []>} : vector<32x32xbf16>, vector<32x384xbf16>, vector<32x384xf32> -> vector<32x384xf32>
    %c0_12 = arith.constant 0 : index
    %c0_13 = arith.constant 0 : index
    %c0_14 = arith.constant 0 : index
    %16 = vector.load %arg6[%c0_12, %c0_13, %c0_14] : memref<1x32x1xf32, #tpu.memory_space<vmem>>, vector<1x32x1xf32>
    %17 = vector.shape_cast %16 : vector<1x32x1xf32> to vector<32x1xf32>
    %18 = vector.broadcast %17 : vector<32x1xf32> to vector<32x384xf32>
    %19 = arith.addf %15, %18 : vector<32x384xf32>
    %cst_15 = arith.constant 0.000000e+00 : f32
    %20 = vector.broadcast %cst_15 : f32 to vector<32x384xf32>
    %21 = arith.maximumf %19, %20 : vector<32x384xf32>
    %22 = arith.truncf %21 : vector<32x384xf32> to vector<32x384xbf16>
    %c0_16 = arith.constant 0 : index
    %c0_17 = arith.constant 0 : index
    %c0_18 = arith.constant 0 : index
    %23 = vector.load %arg7[%c0_16, %c0_17, %c0_18] : memref<1x32x32xbf16, #tpu.memory_space<vmem>>, vector<1x32x32xbf16>
    %24 = vector.shape_cast %23 : vector<1x32x32xbf16> to vector<32x32xbf16>
    %cst_19 = arith.constant dense<0.000000e+00> : vector<32x384xf32>
    %25 = tpu.matmul %24, %22, %cst_19 {dimension_numbers = #tpu.dot_dimension_numbers<[1], [0], [0], [1], [0, 0, 1, 1], [], []>} : vector<32x32xbf16>, vector<32x384xbf16>, vector<32x384xf32> -> vector<32x384xf32>
    %c0_20 = arith.constant 0 : index
    %c0_21 = arith.constant 0 : index
    %c0_22 = arith.constant 0 : index
    %26 = vector.load %arg8[%c0_20, %c0_21, %c0_22] : memref<1x32x1xf32, #tpu.memory_space<vmem>>, vector<1x32x1xf32>
    %27 = vector.shape_cast %26 : vector<1x32x1xf32> to vector<32x1xf32>
    %28 = vector.broadcast %27 : vector<32x1xf32> to vector<32x384xf32>
    %29 = arith.addf %25, %28 : vector<32x384xf32>
    %c1_i32 = arith.constant 1 : i32
    %30 = arith.cmpi eq, %1, %c1_i32 : i32
    %cst_23 = arith.constant 9.99999996E-13 : f32
    %cst_24 = arith.constant 0.000000e+00 : f32
    %31 = arith.select %30, %cst_23, %cst_24 : f32
    %32 = vector.broadcast %31 : f32 to vector<32x384xf32>
    %33 = arith.addf %29, %32 : vector<32x384xf32>
    %34 = arith.mulf %33, %33 : vector<32x384xf32>
    %cst_25 = arith.constant dense<0.000000e+00> : vector<384xf32>
    %35 = vector.multi_reduction <add>, %34, %cst_25 [0] : vector<32x384xf32> to vector<384xf32>
    %36 = vector.shape_cast %35 : vector<384xf32> to vector<1x384xf32>
    %37 = math.rsqrt %36 : vector<1x384xf32>
    %38 = vector.broadcast %37 : vector<1x384xf32> to vector<32x384xf32>
    %39 = arith.mulf %29, %38 : vector<32x384xf32>
    %c0_26 = arith.constant 0 : index
    %c0_27 = arith.constant 0 : index
    %40 = vector.load %arg9[%c0_26, %c0_27] : memref<32x384xf32, #tpu.memory_space<vmem>>, vector<32x384xf32>
    tpu.vector_store %arg9[%c0_26, %c0_27], %39 {strides = array<i32>} : memref<32x384xf32, #tpu.memory_space<vmem>>, vector<32x384xf32>,
    return
  }
  func.func @transform_0(%arg0: i32, %arg1: memref<2xi32, #tpu.memory_space<smem>>) -> (i32, i32) {
    %c0_i32 = arith.constant 0 : i32
    %c0_i32_0 = arith.constant 0 : i32
    return %c0_i32, %arg0 : i32, i32
  }
  func.func @transform_1(%arg0: i32, %arg1: memref<2xi32, #tpu.memory_space<smem>>) -> (i32, i32, i32) {
    %0 = arith.index_cast %arg0 : i32 to index
    %1 = memref.load %arg1[%0] : memref<2xi32, #tpu.memory_space<smem>>
    %c0_i32 = arith.constant 0 : i32
    %c0_i32_0 = arith.constant 0 : i32
    %c0_i32_1 = arith.constant 0 : i32
    return %1, %c0_i32, %c0_i32_0 : i32, i32, i32
  }
  func.func @transform_2(%arg0: i32, %arg1: memref<2xi32, #tpu.memory_space<smem>>) -> (i32, i32, i32) {
    %0 = arith.index_cast %arg0 : i32 to index
    %1 = memref.load %arg1[%0] : memref<2xi32, #tpu.memory_space<smem>>
    %c0_i32 = arith.constant 0 : i32
    %c0_i32_0 = arith.constant 0 : i32
    %c0_i32_1 = arith.constant 0 : i32
    return %1, %c0_i32, %c0_i32_0 : i32, i32, i32
  }
  func.func @transform_3(%arg0: i32, %arg1: memref<2xi32, #tpu.memory_space<smem>>) -> (i32, i32, i32) {
    %0 = arith.index_cast %arg0 : i32 to index
    %1 = memref.load %arg1[%0] : memref<2xi32, #tpu.memory_space<smem>>
    %c0_i32 = arith.constant 0 : i32
    %c0_i32_0 = arith.constant 0 : i32
    %c0_i32_1 = arith.constant 0 : i32
    return %1, %c0_i32, %c0_i32_0 : i32, i32, i32
  }
  func.func @transform_4(%arg0: i32, %arg1: memref<2xi32, #tpu.memory_space<smem>>) -> (i32, i32, i32) {
    %0 = arith.index_cast %arg0 : i32 to index
    %1 = memref.load %arg1[%0] : memref<2xi32, #tpu.memory_space<smem>>
    %c0_i32 = arith.constant 0 : i32
    %c0_i32_0 = arith.constant 0 : i32
    %c0_i32_1 = arith.constant 0 : i32
    return %1, %c0_i32, %c0_i32_0 : i32, i32, i32
  }
  func.func @transform_5(%arg0: i32, %arg1: memref<2xi32, #tpu.memory_space<smem>>) -> (i32, i32, i32) {
    %0 = arith.index_cast %arg0 : i32 to index
    %1 = memref.load %arg1[%0] : memref<2xi32, #tpu.memory_space<smem>>
    %c0_i32 = arith.constant 0 : i32
    %c0_i32_0 = arith.constant 0 : i32
    %c0_i32_1 = arith.constant 0 : i32
    return %1, %c0_i32, %c0_i32_0 : i32, i32, i32
  }
  func.func @transform_6(%arg0: i32, %arg1: memref<2xi32, #tpu.memory_space<smem>>) -> (i32, i32, i32) {
    %0 = arith.index_cast %arg0 : i32 to index
    %1 = memref.load %arg1[%0] : memref<2xi32, #tpu.memory_space<smem>>
    %c0_i32 = arith.constant 0 : i32
    %c0_i32_0 = arith.constant 0 : i32
    %c0_i32_1 = arith.constant 0 : i32
    return %1, %c0_i32, %c0_i32_0 : i32, i32, i32
  }
  func.func @transform_7(%arg0: i32, %arg1: memref<2xi32, #tpu.memory_space<smem>>) -> (i32, i32) {
    %c0_i32 = arith.constant 0 : i32
    %c0_i32_0 = arith.constant 0 : i32
    return %c0_i32, %arg0 : i32, i32
  }
}

</mosaic_0001>

<bundles_post_ra>
// kernel: _fused_forward.1
= control target key start
LH: loop header
LB: loop body
LE: loop exit
PB: predicated region body
PF: predicated region fallthrough
CT: control target
= control target key end

     0   :  { %s1233_s30 = smov [#allocation3]   ;;  %s1476_s0 = inlined_call_operand.vmem [shape: s32[2], index: 0, kind: input, shape index: {}]   ;;  %s1477_s1 = inlined_call_operand.vmem [shape: bf16[4,768], index: 1, kind: input, shape index: {}]   ;;  %s1478_s2 = inlined_call_operand.vmem [shape: bf16[2,32,4], index: 2, kind: input, shape index: {}]   ;;  %s1479_s3 = inlined_call_operand.vmem [shape: f32[2,32,1], index: 3, kind: input, shape index: {}]   ;;  %s1480_s4 = inlined_call_operand.vmem [shape: bf16[2,32,32], index: 4, kind: input, shape index: {}]   ;;  %s1481_s5 = inlined_call_operand.vmem [shape: f32[2,32,1], index: 5, kind: input, shape index: {}]   ;;  %s1482_s6 = inlined_call_operand.vmem [shape: bf16[2,32,32], index: 6, kind: input, shape index: {}]   ;;  %s1483_s7 = inlined_call_operand.vmem [shape: f32[2,32,1], index: 7, kind: input, shape index: {}]   ;;  %s1484_s8 = inlined_call_operand.vmem [shape: f32[32,768], index: 8, kind: output, shape index: {}]  }
   0x1   :  { %s14_s29 = sshll.u32 %s1476_s0, 4  ;;  %s15_s29 = int_to_ptr.vmem [resolvable:$true] %s14_s29 }
   0x2   :  { %17 = dma.vmem_to_smem %s15_s29, 16, %s1233_s30, [#allocation2] }
   0x3   :  { %1219 = dma.done.wait [#allocation2], 16 }
   0x4   :  { %1220 = vsyncadd [#allocation2], 4294967280 }
   0x5   :  { %20 = sfence }
   0x6   :  { %s1283_s9 = smov 0   ;;  %s1285_s10 = smov 0  }
   0x7   :  { %s1287_s11 = smov 0  }
   0x8 LB: > { %s1296_s0 = sadd.s32 4294967295, %s1231_s11   ;;  %s1298_s12 = sadd.s32 1, %s1231_s11   ;;  %s1231_s11 = sphi %s1287_s11, %s1488_s11   ;;  %s1227_s10 = sphi %s1285_s10, %s1487_s10   ;;  %s1223_s9 = sphi %s1283_s9, %s1486_s9  }
   0x9   : > { %s224_s13 = ssub.s32 %s1231_s11, %s1298_s12  ;;  %s227_s14 = sadd.s32 1, %s1227_s10 }
   0xa   : > { %p225_p0 = scmp.eq.s32.totalorder %s224_s13, 0  ;;  %p237_p1 = scmp.ne.s32.totalorder %s1227_s10, %s1223_s9 }
   0xb   : > { %p238_p2 = scmp.eq.s32.totalorder %s1296_s0, 1  ;;  %p1086_p3 = scmp.ge.s32.totalorder %s1231_s11, 1 }
   0xc   : > { %s1306_s15 = scalar_select %p225_p0, %s1227_s10, %s227_s14  }
   0xd   : > { %p1308_p4 = por %p238_p2, %p237_p1  ;;  %p331_p5 = scmp.lt.s32.totalorder %s1231_s11, 3 }
   0xf   : > { %p332_p6 = pnand %p1086_p3, %p331_p5 }
  0x10   : > { %s398_s17 = smul.u32 (!%p332_p6), 3, %s1296_s0  ;;  %s404_s18 = sld [smem:[#allocation3 + %s1296_s0]] (!%p332_p6) }
  0x11   : > { %335 = sbr.rel (%p332_p6) target bundleno = 589 (0x24d), region = 48  ;;  %s411_s19 = sld [smem:[#allocation3 + %s1296_s0]] (!%p332_p6) }
  0x12   : > { %p399_p7 = scmp.lt.s32.totalorder (!%p332_p6), %s398_s17, 5  ;;  %s425_s20 = sld [smem:[#allocation3 + %s1296_s0]] (!%p332_p6) }
  0x13   : > { %s439_s14 = sld [smem:[#allocation3 + %s1296_s0]] (!%p332_p6) }
  0x14   : > { %s432_s30 = sld [smem:[#allocation3 + %s1296_s0]] (!%p332_p6) }
  0x16   : > { %v1234_v0 = vmov 0   ;;  %s1490_s17 = smov (!%p399_p7, %s398_s17), 5  ;;  %p405_p8 = scmp.lt.s32.totalorder %s404_s18, 1  ;;  %vm500_vm0 = vcmask 1041408   ;;  %vm493_vm1 = vcmask 31744   ;;  %vm620_vm2 = vcmask 261120  }
  0x17   : > { %1186 = vset.pattern.permute.xlu0 %v1234_v0  ;;  %1187 = vset.pattern.permute.xlu1 %v1234_v0  ;;  %s1087_s21 = sshll.u32 %s1490_s17, 1  ;;  %p412_p9 = scmp.lt.s32.totalorder %s411_s19, 1 }
  0x18   : > { %1188 = vset.pattern.permute.xlu2 %v1234_v0  ;;  %s402_s24 = scalar_lea.vmem %s1477_s1, %s1087_s21  ;;  %s1492_s18 = smov (!%p405_p8, %s404_s18), 1 }
  0x19   : > { %v449_v1 = vld [vmem:[%s402_s24] sm:$0x3f]  ;;  %s1494_s19 = smov (!%p412_p9, %s411_s19), 1  ;;  %s1145_s25 = sshll.u32 %s1492_s18, 4 }
  0x1a   : > { %489 = vst [vmem:[#allocation1] ss:$4 sm:$0xff] %v449_v1  ;;  %s1146_s26 = sshll.u32 %s1494_s19, 5  ;;  %s409_s29 = scalar_lea.vmem %s1478_s2, %s1145_s25 }
  0x1b   : > { %s416_s13 = scalar_lea.vmem %s1479_s3, %s1146_s26  ;;  %p426_p10 = scmp.lt.s32.totalorder %s425_s20, 1  ;;  %v1152_v4 = vld [vmem:[%s409_s29 + $0x8] sm:$0xff]  ;;  %v1151_v5 = vld [vmem:[%s409_s29] sm:$0xff] }
  0x1c   : > { %v456_v2 = vld [vmem:[%s416_s13 + $0x10] sm:$0xff]  ;;  %v454_v3 = vld [vmem:[%s416_s13] sm:$0xff]  ;;  %v457_v12 = vld [vmem:[%s416_s13 + $0x18] sm:$0xff]  ;;  %p440_p11 = scmp.lt.s32.totalorder %s439_s14, 1  ;;  %s418_s25 = sld [smem:[#allocation3 + %s1296_s0]] }
  0x1d   : > { %470 = vperm.xlu0 %1186, %v456_v2   ;;  %460 = vperm.xlu1 %1187, %v454_v3   ;;  %s1496_s20 = smov (!%p426_p10, %s425_s20), 1  ;;  %v455_v13 = vld [vmem:[%s416_s13 + $0x8] sm:$0xff]  ;;  %p433_p13 = scmp.lt.s32.totalorder %s432_s30, 1 }
  0x1e   : > { %s1148_s17 = sshll.u32 %s1496_s20, 5  ;;  %s1498_s14 = smov (!%p440_p11, %s439_s14), 1 }
  0x1f   : > { %s1332_s21 = scalar_lea.vmem %s1481_s5, %s1148_s17  ;;  %s1150_s22 = sshll.u32 %s1498_s14, 5 }
  0x20   : > { %v586_v14 = vld [vmem:[%s1332_s21] sm:$0xff]  ;;  %v587_v15 = vld [vmem:[%s1332_s21 + $0x8] sm:$0xff]  ;;  %s1339_s24 = scalar_lea.vmem %s1483_s7, %s1150_s22  ;;  %v588_v54 = vld [vmem:[%s1332_s21 + $0x10] sm:$0xff]  ;;  %s1502_s30 = smov (!%p433_p13, %s432_s30), 1 }
  0x21   : > { %v490_v6 = vld.sshfl [vmem:[#allocation1] sm:$0xff pattern:$0x73625140]  ;;  %v492_v7 = vld.sshfl [vmem:[#allocation1 + $0x10] sm:$0xff pattern:$0x73625140]  ;;  %602 = vperm.xlu2 %1188, %v588_v54  }
  0x22   : > { %v501_v8 = vsel %vm500_vm0, %v490_v6, 0  ;;  %v505_v9 = vsel %vm500_vm0, %v492_v7, 0  ;;  %v491_v10 = vld.sshfl [vmem:[#allocation1 + $0x8] sm:$0xff pattern:$0x73625140]  ;;  %v708_v17 = vld [vmem:[%s1339_s24 + $0x10] sm:$0xff] }
  0x23   : > { %1158 = vmatpush.bf16.msra.mxu1 %v501_v8  ;;  %552 = vmatpush.bf16.msra.mxu2 %v505_v9  ;;  %v503_v11 = vsel %vm500_vm0, %v491_v10, 0  ;;  %v707_v16 = vld [vmem:[%s1339_s24 + $0x8] sm:$0xff]  ;;  %p419_p12 = scmp.lt.s32.totalorder %s418_s25, 1  ;;  %v589_v63 = vld [vmem:[%s1332_s21 + $0x18] sm:$0xff]  ;;  %s1149_s11 = sshll.u32 %s1502_s30, 4 }
  0x24   : > { %514 = vmatpush.bf16.msra.mxu0 %v501_v8  ;;  %s437_s17 = scalar_lea.vmem %s1482_s6, %s1149_s11  ;;  %s448_s18 = sld [smem:[#allocation3 + %s1296_s0]] }
  0x25   : > { %475 = vperm.xlu0 %1186, %v457_v12   ;;  %465 = vperm.xlu1 %1187, %v455_v13   ;;  %s1500_s25 = smov (!%p419_p12, %s418_s25), 1  ;;  %s395_s21 = sand.u32 1, %s1223_s9  }
  0x26   : > { %1109 = vmatmul.msk.bf16.vlgmr.msra.gmra.mxu1 %vm493_vm1, %v1152_v4  ;;  %1112 = vmatmul.msk.bf16.vlgmr.msra.gmra.mxu2 %vm493_vm1, %v1151_v5  ;;  %s1147_s26 = sshll.u32 %s1500_s25, 4  ;;  %s1159_s22 = smul.u32 96, %s395_s21 }
  0x27   : > { %533 = vmatpush.bf16.msrb.mxu1 %v503_v11  ;;  %1108 = vmatmul.msk.bf16.vlgmr.msra.gmra.mxu0 %vm493_vm1, %v1151_v5  ;;  %s423_s29 = scalar_lea.vmem %s1480_s4, %s1147_s26  ;;  %s1157_s20 = smul.u32 (%p1308_p4), 24, %s1296_s0 }
  0x28   : > { %v1153_v39 = vld [vmem:[%s423_s29] sm:$0xff]  ;;  %v1154_v50 = vld [vmem:[%s423_s29 + $0x8] sm:$0xff]  ;;  %s1426_s9 = scalar_lea.vmem [#allocation4], %s1159_s22 }
  0x29   : > { %607 = vperm.xlu2 %1188, %v589_v63   ;;  %s920_s25 = scalar_lea.vmem (%p1308_p4), %s1484_s8, %s1157_s20 }
  0x2a   : > { %p803_p0 = scmp.eq.s32.totalorder %s448_s18, 1 }
  0x2c   : > { %s804_s19 = scalar_select %p803_p0, 1e-12, 0.0 }
  0x2d   : > { %592 = vperm.xlu0 %1186, %v586_v14   ;;  %597 = vperm.xlu1 %1187, %v587_v15  }
  0x35   : > { %717 = vperm.xlu0 %1186, %v707_v16   ;;  %722 = vperm.xlu1 %1187, %v708_v17  }
  0x36   : > { %1110 = vmatmul.msk.bf16.vlgmr.msrb.gmra.mxu1 %vm493_vm1, %v1151_v5  ;;  %1113 = vmatmul.msk.bf16.gmra.mxu2 %vm493_vm1, %v1152_v4  ;;  %v709_v5 = vld [vmem:[%s1339_s24 + $0x18] sm:$0xff] }
  0x46   : > { %1111 = vmatmul.msk.bf16.gmra.mxu1 %vm493_vm1, %v1152_v4  ;;  %v706_v4 = vld [vmem:[%s1339_s24] sm:$0xff] }
  0x47   : > { %712 = vperm.xlu2 %1188, %v706_v4  }
  0x4f   : > { %727 = vperm.xlu2 %1188, %v709_v5  }
  0x7b   : > { %v603_v8 = vpop.permute.xlu2 %602 }
  0x83   : > { %v608_v12 = vpop.permute.xlu2 %607 }
  0x8f   : > { %v471_v18 = vpop.permute.xlu0 %470  ;;  %v461_v19 = vpop.permute.xlu1 %460 }
  0x97   : > { %v476_v23 = vpop.permute.xlu0 %475  ;;  %v466_v26 = vpop.permute.xlu1 %465 }
  0x9f   : > { %v598_v13 = vpop.permute.xlu1 %597 }
  0xa3   : > { %v521_v20 = vpop.f32.mrf.mxu1 }
  0xa4   : > { %v516_v21 = vpop.f32.mrf.mxu0  ;;  %v522_v24 = vadd.f32 %v521_v20, %v471_v18 }
  0xa5   : > { %v517_v25 = vadd.f32 %v516_v21, %v461_v19 }
  0xa6   : > { %v570_v31 = vmax.f32 %v522_v24, 0.0 }
  0xa7   : > { %v564_v32 = vmax.f32 %v517_v25, 0.0 }
  0xa9   : > { %v554_v22 = vpop.f32.mrf.mxu2 }
  0xaa   : > { %v555_v44 = vadd.f32 %v554_v22, %v461_v19 }
  0xab   : > { %v523_v27 = vpop.f32.mrf.mxu1 }
  0xac   : > { %v524_v28 = vadd.f32 %v523_v27, %v476_v23  ;;  %v518_v29 = vpop.f32.mrf.mxu0  ;;  %v566_v51 = vmax.f32 %v555_v44, 0.0  ;;  %v1156_v44 = vld [vmem:[%s437_s17 + $0x8] sm:$0xff] }
  0xad   : > { %v519_v30 = vadd.f32 %v518_v29, %v466_v26  ;;  %v1155_v29 = vld [vmem:[%s437_s17] sm:$0xff] }
  0xae   : > { %v573_v33 = vmax.f32 %v524_v28, 0.0 }
  0xaf   : > { %v567_v34 = vmax.f32 %v519_v30, 0.0 }
  0xb0   : > { %v579_v35 = vpack.c.bf16 %v573_v33, %v570_v31 }
  0xb1   : > { %v556_v36 = vpop.f32.mrf.mxu2  ;;  %v576_v37 = vpack.c.bf16 %v567_v34, %v564_v32 }
  0xb2   : > { %633 = vmatpush.bf16.msra.mxu3 %v579_v35  ;;  %v557_v45 = vadd.f32 %v556_v36, %v466_v26 }
  0xb3   : > { %v535_v38 = vpop.f32.mrf.mxu1 }
  0xb4   : > { %v569_v52 = vmax.f32 %v557_v45, 0.0  ;;  %v536_v60 = vadd.f32 %v535_v38, %v461_v19  ;;  %v593_v19 = vpop.permute.xlu0 %592 }
  0xb6   : > { %634 = vmatpush.bf16.msra.mxu3 %v576_v37  ;;  %v578_v55 = vpack.c.bf16 %v569_v52, %v566_v51  ;;  %v565_v2 = vmax.f32 %v536_v60, 0.0  ;;  %v723_v60 = vpop.permute.xlu1 %722 }
  0xb9   : > { %v559_v40 = vpop.f32.mrf.mxu2  ;;  %1122 = vmatmul.msk.bf16.vlgmr.msra.gmra.mxu3 %vm620_vm2, %v1153_v39 }
  0xba   : > { %v560_v42 = vadd.f32 %v559_v40, %v471_v18 }
  0xbb   : > { %v537_v41 = vpop.f32.mrf.mxu1 }
  0xbc   : > { %v572_v48 = vmax.f32 %v560_v42, 0.0  ;;  %v538_v58 = vadd.f32 %v537_v41, %v466_v26 }
  0xbe   : > { %v568_v0 = vmax.f32 %v538_v58, 0.0  ;;  %v713_v58 = vpop.permute.xlu2 %712 }
  0xc0   : > { %v577_v3 = vpack.c.bf16 %v568_v0, %v565_v2  ;;  %v1377_v0 = vstv %s804_s19 }
  0xc1   : > { %v561_v43 = vpop.f32.mrf.mxu2 }
  0xc2   : > { %v562_v46 = vadd.f32 %v561_v43, %v476_v23 }
  0xc3   : > { %v540_v47 = vpop.f32.mrf.mxu1 }
  0xc4   : > { %v575_v49 = vmax.f32 %v562_v46, 0.0  ;;  %v541_v56 = vadd.f32 %v540_v47, %v471_v18 }
  0xc6   : > { %v581_v53 = vpack.c.bf16 %v575_v49, %v572_v48  ;;  %v571_v61 = vmax.f32 %v541_v56, 0.0 }
  0xc8   : > { %671 = vmatpush.bf16.msra.mxu1 %v581_v53 }
  0xc9   : > { %1123 = vmatmul.msk.bf16.gmra.mxu3 %vm620_vm2, %v1154_v50 }
  0xcb   : > { %v542_v57 = vpop.f32.mrf.mxu1 }
  0xcc   : > { %v543_v59 = vadd.f32 %v542_v57, %v476_v23  ;;  %672 = vmatpush.bf16.msra.mxu1 %v578_v55  ;;  %v718_v57 = vpop.permute.xlu0 %717 }
  0xce   : > { %v574_v62 = vmax.f32 %v543_v59, 0.0 }
  0xcf   : > { %1126 = vmatmul.msk.bf16.vlgmr.msra.gmra.mxu1 %vm620_vm2, %v1153_v39 }
  0xd0   : > { %v580_v1 = vpack.c.bf16 %v574_v62, %v571_v61 }
  0xd2   : > { %652 = vmatpush.bf16.msrb.mxu0 %v580_v1 }
  0xd6   : > { %653 = vmatpush.bf16.msrb.mxu0 %v577_v3 }
  0xd9   : > { %1124 = vmatmul.msk.bf16.vlgmr.msrb.gmra.mxu0 %vm620_vm2, %v1153_v39 }
  0xdf   : > { %1127 = vmatmul.msk.bf16.gmra.mxu1 %vm620_vm2, %v1154_v50 }
  0xe9   : > { %1125 = vmatmul.msk.bf16.gmra.mxu0 %vm620_vm2, %v1154_v50 }
 0x13c   : > { %v636_v6 = vpop.f32.mrf.mxu3 }
 0x13d   : > { %v637_v21 = vadd.f32 %v636_v6, %v593_v19  ;;  %v728_v6 = vpop.permute.xlu2 %727 }
 0x13f   : > { %v684_v25 = vmax.f32 %v637_v21, 0.0 }
 0x144   : > { %v638_v7 = vpop.f32.mrf.mxu3 }
 0x145   : > { %v639_v16 = vadd.f32 %v638_v7, %v598_v13 }
 0x147   : > { %v687_v23 = vmax.f32 %v639_v16, 0.0 }
 0x149   : > { %v696_v27 = vpack.c.bf16 %v687_v23, %v684_v25 }
 0x14c   : > { %v641_v9 = vpop.f32.mrf.mxu3  ;;  %v674_v10 = vpop.f32.mrf.mxu1 }
 0x14d   : > { %v642_v11 = vadd.f32 %v641_v9, %v603_v8  ;;  %v675_v36 = vadd.f32 %v674_v10, %v593_v19 }
 0x14f   : > { %v690_v17 = vmax.f32 %v642_v11, 0.0  ;;  %v686_v40 = vmax.f32 %v675_v36, 0.0 }
 0x154   : > { %v643_v14 = vpop.f32.mrf.mxu3  ;;  %v676_v15 = vpop.f32.mrf.mxu1 }
 0x155   : > { %v644_v18 = vadd.f32 %v643_v14, %v608_v12  ;;  %v677_v32 = vadd.f32 %v676_v15, %v598_v13 }
 0x156   : > { %v655_v20 = vpop.f32.mrf.mxu0 }
 0x157   : > { %v693_v22 = vmax.f32 %v644_v18, 0.0  ;;  %v689_v38 = vmax.f32 %v677_v32, 0.0  ;;  %v656_v47 = vadd.f32 %v655_v20, %v593_v19 }
 0x159   : > { %v699_v24 = vpack.c.bf16 %v693_v22, %v690_v17  ;;  %v698_v41 = vpack.c.bf16 %v689_v38, %v686_v40  ;;  %v685_v52 = vmax.f32 %v656_v47, 0.0 }
 0x15b   : > { %752 = vmatpush.bf16.msrb.mxu2 %v699_v24 }
 0x15c   : > { %v679_v26 = vpop.f32.mrf.mxu1 }
 0x15d   : > { %v680_v30 = vadd.f32 %v679_v26, %v603_v8 }
 0x15e   : > { %v657_v28 = vpop.f32.mrf.mxu0 }
 0x15f   : > { %753 = vmatpush.bf16.msrb.mxu2 %v696_v27  ;;  %v692_v33 = vmax.f32 %v680_v30, 0.0  ;;  %v658_v45 = vadd.f32 %v657_v28, %v598_v13 }
 0x161   : > { %v688_v50 = vmax.f32 %v658_v45, 0.0 }
 0x162   : > { %1136 = vmatmul.msk.bf16.vlgmr.msrb.gmra.mxu2 %vm620_vm2, %v1155_v29 }
 0x163   : > { %v697_v53 = vpack.c.bf16 %v688_v50, %v685_v52 }
 0x164   : > { %v681_v31 = vpop.f32.mrf.mxu1 }
 0x165   : > { %v682_v34 = vadd.f32 %v681_v31, %v608_v12 }
 0x166   : > { %v660_v35 = vpop.f32.mrf.mxu0 }
 0x167   : > { %v695_v37 = vmax.f32 %v682_v34, 0.0  ;;  %v661_v42 = vadd.f32 %v660_v35, %v603_v8 }
 0x169   : > { %v701_v39 = vpack.c.bf16 %v695_v37, %v692_v33  ;;  %v691_v48 = vmax.f32 %v661_v42, 0.0 }
 0x16b   : > { %790 = vmatpush.bf16.msra.mxu0 %v701_v39 }
 0x16e   : > { %v662_v43 = vpop.f32.mrf.mxu0 }
 0x16f   : > { %v663_v46 = vadd.f32 %v662_v43, %v608_v12  ;;  %791 = vmatpush.bf16.msra.mxu0 %v698_v41 }
 0x171   : > { %v694_v49 = vmax.f32 %v663_v46, 0.0 }
 0x172   : > { %1137 = vmatmul.msk.bf16.gmra.mxu2 %vm620_vm2, %v1156_v44  ;;  %1140 = vmatmul.msk.bf16.vlgmr.msra.gmra.mxu0 %vm620_vm2, %v1155_v29 }
 0x173   : > { %v700_v51 = vpack.c.bf16 %v694_v49, %v691_v48 }
 0x175   : > { %771 = vmatpush.bf16.msrb.mxu3 %v700_v51 }
 0x179   : > { %772 = vmatpush.bf16.msrb.mxu3 %v697_v53 }
 0x17c   : > { %1138 = vmatmul.msk.bf16.vlgmr.msrb.gmra.mxu3 %vm620_vm2, %v1155_v29 }
 0x182   : > { %1141 = vmatmul.msk.bf16.gmra.mxu0 %vm620_vm2, %v1156_v44 }
 0x18c   : > { %1139 = vmatmul.msk.bf16.gmra.mxu3 %vm620_vm2, %v1156_v44 }
 0x1e5   : > { %v755_v54 = vpop.f32.mrf.mxu2 }
 0x1e6   : > { %v1373_v62 = vadd.f32 %v755_v54, %v713_v58 }
 0x1e8   : > { %v806_v3 = vadd.f32 %v1377_v0, %v1373_v62 }
 0x1ea   : > { %v818_v8 = vmul.f32 %v806_v3, %v806_v3 }
 0x1ed   : > { %v757_v55 = vpop.f32.mrf.mxu2 }
 0x1ee   : > { %v1371_v59 = vadd.f32 %v757_v55, %v718_v57 }
 0x1ef   : > { %v793_v56 = vpop.f32.mrf.mxu0 }
 0x1f0   : > { %v809_v2 = vadd.f32 %v1377_v0, %v1371_v59  ;;  %v1389_v15 = vadd.f32 %v793_v56, %v713_v58 }
 0x1f2   : > { %v821_v5 = vmul.f32 %v809_v2, %v809_v2  ;;  %v808_v21 = vadd.f32 %v1377_v0, %v1389_v15 }
 0x1f4   : > { %v830_v14 = vadd.f32 %v821_v5, %v818_v8  ;;  %v820_v28 = vmul.f32 %v808_v21, %v808_v21 }
 0x1f5   : > { %v760_v61 = vpop.f32.mrf.mxu2 }
 0x1f6   : > { %v1375_v63 = vadd.f32 %v760_v61, %v723_v60 }
 0x1f7   : > { %v795_v1 = vpop.f32.mrf.mxu0 }
 0x1f8   : > { %v812_v4 = vadd.f32 %v1377_v0, %v1375_v63  ;;  %v1385_v10 = vadd.f32 %v795_v1, %v718_v57 }
 0x1fa   : > { %v824_v9 = vmul.f32 %v812_v4, %v812_v4  ;;  %v811_v19 = vadd.f32 %v1377_v0, %v1385_v10 }
 0x1fc   : > { %v831_v18 = vadd.f32 %v830_v14, %v824_v9  ;;  %v823_v24 = vmul.f32 %v811_v19, %v811_v19 }
 0x1fd   : > { %v762_v7 = vpop.f32.mrf.mxu2 }
 0x1fe   : > { %v1387_v11 = vadd.f32 %v762_v7, %v728_v6  ;;  %v848_v32 = vadd.f32 %v823_v24, %v820_v28 }
 0x1ff   : > { %v774_v12 = vpop.f32.mrf.mxu3  ;;  %v798_v13 = vpop.f32.mrf.mxu0 }
 0x200   : > { %v815_v16 = vadd.f32 %v1377_v0, %v1387_v11  ;;  %v1393_v17 = vadd.f32 %v798_v13, %v723_v60  ;;  %v1407_v43 = vadd.f32 %v774_v12, %v713_v58 }
 0x202   : > { %v827_v20 = vmul.f32 %v815_v16, %v815_v16  ;;  %v814_v23 = vadd.f32 %v1377_v0, %v1393_v17  ;;  %v807_v48 = vadd.f32 %v1377_v0, %v1407_v43 }
 0x204   : > { %v832_v22 = vadd.f32 %v831_v18, %v827_v20  ;;  %v826_v30 = vmul.f32 %v814_v23, %v814_v23  ;;  %v819_v55 = vmul.f32 %v807_v48, %v807_v48 }
 0x206   : > { %v833_v25 = vrot.slane %v832_v22, 4  ;;  %v849_v36 = vadd.f32 %v848_v32, %v826_v30 }
 0x207   : > { %v776_v26 = vpop.f32.mrf.mxu3  ;;  %v800_v27 = vpop.f32.mrf.mxu0 }
 0x208   : > { %v834_v29 = vadd.f32 %v833_v25, %v832_v22  ;;  %v1401_v31 = vadd.f32 %v800_v27, %v728_v6  ;;  %v1405_v39 = vadd.f32 %v776_v26, %v718_v57 }
 0x20a   : > { %v835_v33 = vrot.slane %v834_v29, 2  ;;  %v817_v34 = vadd.f32 %v1377_v0, %v1401_v31  ;;  %v810_v46 = vadd.f32 %v1377_v0, %v1405_v39 }
 0x20c   : > { %v836_v35 = vadd.f32 %v835_v33, %v834_v29  ;;  %v829_v37 = vmul.f32 %v817_v34, %v817_v34  ;;  %v822_v51 = vmul.f32 %v810_v46, %v810_v46 }
 0x20e   : > { %v837_v38 = vrot.slane %v836_v35, 1  ;;  %v850_v40 = vadd.f32 %v849_v36, %v829_v37  ;;  %v839_v61 = vadd.f32 %v822_v51, %v819_v55 }
 0x20f   : > { %v779_v41 = vpop.f32.mrf.mxu3 }
 0x210   : > { %v838_v42 = vadd.f32 %v837_v38, %v836_v35  ;;  %v851_v44 = vrot.slane %v850_v40, 4  ;;  %v1409_v45 = vadd.f32 %v779_v41, %v723_v60 }
 0x212   : > { %1189 = vrsqrt.f32 %v838_v42  ;;  %v852_v47 = vadd.f32 %v851_v44, %v850_v40  ;;  %v813_v50 = vadd.f32 %v1377_v0, %v1409_v45  ;;  %vm863_vm4 = vweird.f32 %v838_v42 }
 0x214   : > { %v853_v49 = vrot.slane %v852_v47, 2  ;;  %v825_v57 = vmul.f32 %v813_v50, %v813_v50 }
 0x216   : > { %v854_v52 = vadd.f32 %v853_v49, %v852_v47  ;;  %v840_v4 = vadd.f32 %v839_v61, %v825_v57 }
 0x217   : > { %v781_v53 = vpop.f32.mrf.mxu3 }
 0x218   : > { %v1190_v54 = vpop.eup %1189  ;;  %v855_v56 = vrot.slane %v854_v52, 1  ;;  %v1417_v58 = vadd.f32 %v781_v53, %v728_v6 }
 0x219   : > { %v858_v60 = vmul.f32 %v1190_v54, %v838_v42  ;;  %vm864_vm3 = vweird.f32 %v1190_v54 }
 0x21a   : > { %v856_v1 = vadd.f32 %v855_v56, %v854_v52  ;;  %v816_v2 = vadd.f32 %v1377_v0, %v1417_v58  ;;  %vm865_vm5 = vmor %vm863_vm4, %vm864_vm3 }
 0x21b   : > { %v859_v3 = vmul.f32 %v1190_v54, %v858_v60 }
 0x21c   : > { %1191 = vrsqrt.f32 %v856_v1  ;;  %v828_v5 = vmul.f32 %v816_v2, %v816_v2  ;;  %vm883_vm7 = vweird.f32 %v856_v1 }
 0x21d   : > { %v860_v7 = vmul.f32 0.5, %v859_v3 }
 0x21e   : > { %v841_v8 = vadd.f32 %v840_v4, %v828_v5 }
 0x21f   : > { %v861_v9 = vsub.f32 1.5, %v860_v7 }
 0x220   : > { %v842_v12 = vrot.slane %v841_v8, 4 }
 0x221   : > { %v862_v13 = vmul.f32 %v1190_v54, %v861_v9 }
 0x222   : > { %v1192_v6 = vpop.eup %1191  ;;  %v843_v14 = vadd.f32 %v842_v12, %v841_v8 }
 0x223   : > { %v866_v16 = vsel %vm865_vm5, %v1190_v54, %v862_v13  ;;  %v878_v18 = vmul.f32 %v1192_v6, %v856_v1  ;;  %vm884_vm6 = vweird.f32 %v1192_v6 }
 0x224   : > { %v887_v0 = vmul.f32 %v866_v16, %v1373_v62  ;;  %v890_v19 = vmul.f32 %v866_v16, %v1371_v59  ;;  %v893_v20 = vmul.f32 %v866_v16, %v1375_v63  ;;  %v896_v21 = vmul.f32 %v866_v16, %v1387_v11  ;;  %vm885_vm8 = vmor %vm883_vm7, %vm884_vm6 }
 0x225   : > { %v879_v22 = vmul.f32 %v1192_v6, %v878_v18  ;;  %v844_v23 = vrot.slane %v843_v14, 2 }
 0x226   : > { %899 = vst [vmem:[%s1426_s9] sm:$0xff] %v887_v0 }
 0x227   : > { %902 = vst [vmem:[%s1426_s9 + $0x18] sm:$0xff] %v890_v19  ;;  %v880_v24 = vmul.f32 0.5, %v879_v22  ;;  %v845_v25 = vadd.f32 %v844_v23, %v843_v14 }
 0x228   : > { %905 = vst [vmem:[%s1426_s9 + $0x30] sm:$0xff] %v893_v20 }
 0x229   : > { %908 = vst [vmem:[%s1426_s9 + $0x48] sm:$0xff] %v896_v21  ;;  %v881_v59 = vsub.f32 1.5, %v880_v24  ;;  %v846_v62 = vrot.slane %v845_v25, 1 }
 0x22b   : > { %v882_v63 = vmul.f32 %v1192_v6, %v881_v59  ;;  %v847_v11 = vadd.f32 %v846_v62, %v845_v25 }
 0x22d   : > { %v886_v26 = vsel %vm885_vm8, %v1192_v6, %v882_v63  ;;  %1193 = vrsqrt.f32 %v847_v11  ;;  %vm873_vm10 = vweird.f32 %v847_v11 }
 0x22e   : > { %v889_v27 = vmul.f32 %v886_v26, %v1389_v15  ;;  %v892_v28 = vmul.f32 %v886_v26, %v1385_v10  ;;  %v895_v29 = vmul.f32 %v886_v26, %v1393_v17  ;;  %v898_v30 = vmul.f32 %v886_v26, %v1401_v31  ;;  %v939_v42 = vld [vmem:[%s1426_s9 + $0x18] sm:$0xff] (%p1308_p4) }
 0x22f   : > { %940 = vst [vmem:[%s920_s25 + $0x30] sm:$0xff] (%p1308_p4), %v939_v42 }
 0x230   : > { %901 = vst [vmem:[%s1426_s9 + $0x10] sm:$0xff] %v889_v27  ;;  %v951_v48 = vld [vmem:[%s1426_s9 + $0x48] sm:$0xff] (%p1308_p4) }
 0x231   : > { %904 = vst [vmem:[%s1426_s9 + $0x28] sm:$0xff] %v892_v28 }
 0x232   : > { %907 = vst [vmem:[%s1426_s9 + $0x40] sm:$0xff] %v895_v29 }
 0x233   : > { %v1194_v32 = vpop.eup %1193  ;;  %910 = vst [vmem:[%s1426_s9 + $0x58] sm:$0xff] %v898_v30 }
 0x234   : > { %v868_v33 = vmul.f32 %v1194_v32, %v847_v11  ;;  %vm874_vm9 = vweird.f32 %v1194_v32  ;;  %952 = vst [vmem:[%s920_s25 + $0x90] sm:$0xff] (%p1308_p4), %v951_v48 }
 0x235   : > { %vm875_vm11 = vmor %vm873_vm10, %vm874_vm9 }
 0x236   : > { %v869_v34 = vmul.f32 %v1194_v32, %v868_v33 }
 0x237   : > { %v937_v41 = vld [vmem:[%s1426_s9 + $0x10] sm:$0xff] (%p1308_p4) }
 0x238   : > { %v870_v35 = vmul.f32 0.5, %v869_v34  ;;  %938 = vst [vmem:[%s920_s25 + $0x10] sm:$0xff] (%p1308_p4), %v937_v41  ;;  %v943_v44 = vld [vmem:[%s1426_s9 + $0x28] sm:$0xff] (%p1308_p4) }
 0x239   : > { %944 = vst [vmem:[%s920_s25 + $0x40] sm:$0xff] (%p1308_p4), %v943_v44  ;;  %v949_v47 = vld [vmem:[%s1426_s9 + $0x40] sm:$0xff] (%p1308_p4) }
 0x23a   : > { %v871_v36 = vsub.f32 1.5, %v870_v35  ;;  %950 = vst [vmem:[%s920_s25 + $0x70] sm:$0xff] (%p1308_p4), %v949_v47  ;;  %v955_v50 = vld [vmem:[%s1426_s9 + $0x58] sm:$0xff] (%p1308_p4) }
 0x23b   : > { %956 = vst [vmem:[%s920_s25 + $0xa0] sm:$0xff] (%p1308_p4), %v955_v50 }
 0x23c   : > { %v872_v15 = vmul.f32 %v1194_v32, %v871_v36 }
 0x23e   : > { %v876_v10 = vsel %vm875_vm11, %v1194_v32, %v872_v15 }
 0x23f   : > { %v888_v17 = vmul.f32 %v876_v10, %v1407_v43  ;;  %v891_v31 = vmul.f32 %v876_v10, %v1405_v39  ;;  %v894_v37 = vmul.f32 %v876_v10, %v1409_v45  ;;  %v897_v38 = vmul.f32 %v876_v10, %v1417_v58  ;;  %v933_v39 = vld [vmem:[%s1426_s9] sm:$0xff] (%p1308_p4)  ;;  %v945_v45 = vld [vmem:[%s1426_s9 + $0x30] sm:$0xff] (%p1308_p4) }
 0x240   : > { %917 = sbr.rel (!%p1308_p4) target bundleno = 589 (0x24d), region = 52  ;;  %934 = vst [vmem:[%s920_s25] sm:$0xff] (%p1308_p4), %v933_v39 }
 0x241   : > { %900 = vst [vmem:[%s1426_s9 + $0x8] sm:$0xff] %v888_v17 }
 0x242   : > { %903 = vst [vmem:[%s1426_s9 + $0x20] sm:$0xff] %v891_v31 }
 0x243   : > { %906 = vst [vmem:[%s1426_s9 + $0x38] sm:$0xff] %v894_v37 }
 0x244   : > { %909 = vst [vmem:[%s1426_s9 + $0x50] sm:$0xff] %v897_v38 }
 0x245   : > { %946 = vst [vmem:[%s920_s25 + $0x60] sm:$0xff] %v945_v45 }
 0x248   : > { %v935_v40 = vld [vmem:[%s1426_s9 + $0x8] sm:$0xff] }
 0x249   : > { %936 = vst [vmem:[%s920_s25 + $0x8] sm:$0xff] %v935_v40  ;;  %v941_v43 = vld [vmem:[%s1426_s9 + $0x20] sm:$0xff] }
 0x24a   : > { %942 = vst [vmem:[%s920_s25 + $0x38] sm:$0xff] %v941_v43  ;;  %v947_v46 = vld [vmem:[%s1426_s9 + $0x38] sm:$0xff] }
 0x24b   : > { %948 = vst [vmem:[%s920_s25 + $0x68] sm:$0xff] %v947_v46  ;;  %v953_v49 = vld [vmem:[%s1426_s9 + $0x50] sm:$0xff] }
 0x24c   : > { %954 = vst [vmem:[%s920_s25 + $0x98] sm:$0xff] %v953_v49 }
 0x24d PF: > { %p23_p1 = scmp.ge.s32.totalorder %s1298_s12, 4   ;;  %s1486_s9 = smov %s1227_s10 }
 0x24e   : > { %s1487_s10 = smov %s1306_s15  ;;  %s1488_s11 = smov %s1298_s12 }
 0x24f   :  { %25 = sbr.rel (!%p23_p1) target bundleno = 8 (0x8), region = 119 }

</bundles_post_ra>
